<compile_context>
chip_gen: v7x
topology: tpu7x:2x2x1
jax: 0.10.0
libtpu: 0.0.40
codegen_flags: <defaults>
</compile_context>

<pallas_src>
import functools

import jax
import jax.numpy as jnp
from jax import lax
from jax.experimental import pallas as pl
from jax.experimental.pallas import tpu as pltpu


def _round_up(x, m):
    return (x + m - 1) // m * m


def _cdiv(a, b):
    return (a + b - 1) // b


def _vmem_capacity_bytes(default=64 * 1024 * 1024):
    """Physical VMEM of the attached TPU; conservative (v7x) default on failure."""
    try:
        info = pltpu.get_tpu_info()
        cap = getattr(info, "vmem_capacity_bytes", None)
        if cap:
            return int(cap)
    except Exception:
        pass
    return default


def _choose_batch_block(B, C):
    """Fold several batch elements into one block when C is small (fills MXU
    rows / sublanes and cuts grid-step count).  Must divide B."""
    cap = max(1, min(B, 256 // max(C, 1)))
    for b in range(cap, 0, -1):
        if B % b == 0:
            return b
    return 1


def _choose_hw_tile(C, b_blk, HW, itemsize, budget_bytes):
    """Largest HW tile (multiple of 128) whose per-step working set fits the
    generation-aware VMEM budget."""
    hw128 = _round_up(HW, 128)
    # Per HW column: double-buffered x + out tiles (native dtype) + ~3 f32 temps.
    per_col = b_blk * C * (4 * itemsize + 12)
    # Resident (C, C)-sized blocks: W (double-buffered, native) + f32 gram block.
    fixed = b_blk * C * C * (2 * itemsize + 8)
    avail = max(budget_bytes - fixed, per_col * 128)
    t_max = max((avail // per_col) // 128 * 128, 128)
    n_tiles = _cdiv(hw128, t_max)
    return _round_up(_cdiv(hw128, n_tiles), 128)


# ----------------------------------------------------------------------------
# Pass 1a: partial gram accumulation over HW tiles.
# ----------------------------------------------------------------------------
def _gram_partial_kernel(x_ref, e_ref, *, hw_tile, n_per, hw_total, mask_tail):
    """x_ref: (b_blk, C, hw_tile) native dtype; e_ref: (b_blk, C, C) f32,
    resident accumulator across the innermost (HW-tile) grid axis."""
    k = pl.program_id(2)

    @pl.when(k == 0)
    def _init():
        e_ref[...] = jnp.zeros_like(e_ref)

    x = x_ref[...]  # native dtype: bf16 feeds the MXU at full rate
    if mask_tail:
        # Ragged tail (or out-of-range overshoot tile of an uneven split):
        # OOB columns of a partial block are undefined, mask them to zero.
        g = pl.program_id(0) * n_per + k  # global HW-tile index
        col = lax.broadcasted_iota(jnp.int32, x.shape, 2) + g * hw_tile
        x = jnp.where(col < hw_total, x, jnp.zeros_like(x))

    # energy[b, i, j] += sum_k x[b, i, k] * x[b, j, k]; contracting the lane
    # (last) dim of both operands is the MXU-native q @ k^T pattern.
    e_ref[...] += jnp.einsum(
        "bck,bdk->bcd", x, x, preferred_element_type=jnp.float32
    )


# ----------------------------------------------------------------------------
# Pass 1b: sum split partials + fused stabilized softmax, emit W in x.dtype.
# ----------------------------------------------------------------------------
def _softmax_weights_kernel(e_ref, w_ref):
    """e_ref: (n_split, b_blk, C, C) f32 partials; w_ref: (b_blk, C, C) x.dtype."""
    energy = jnp.sum(e_ref[...], axis=0)
    # softmax(rowmax(E) - E) == exp(rowmin(E) - E) / rowsum(...): a single
    # cross-lane reduction does the stabilization.
    p = jnp.exp(jnp.min(energy, axis=-1, keepdims=True) - energy)
    denom = jnp.sum(p, axis=-1, keepdims=True)
    # EUP approximate reciprocal + one Newton step on the tiny (.., C, 1)
    # column: avoids a (C, C) VALU divide while keeping ~f32 accuracy.
    inv = pl.reciprocal(denom, approx=True)
    inv = inv * (2.0 - denom * inv)
    w_ref[...] = (p * inv).astype(w_ref.dtype)


# ----------------------------------------------------------------------------
# Pass 2: y = alpha * (W @ x) + x, streamed over (batch-block, HW tile).
# ----------------------------------------------------------------------------
def _apply_kernel(alpha_ref, w_ref, x_ref, o_ref):
    x = x_ref[...]                       # (b_blk, C, hw_tile), native dtype
    w = w_ref[...]                       # (b_blk, C, C), native dtype (no cast)
    y = jnp.einsum("bcd,bdk->bck", w, x, preferred_element_type=jnp.float32)
    # Residual / scale in f32, single cast on the way out.
    o_ref[...] = (alpha_ref[0] * y + x.astype(jnp.float32)).astype(o_ref.dtype)


def cha_att_block(x, alpha, *, hw_tile=None):
    """x: (B, C, H, W) NCHW like PyTorch; alpha: (1,) scale parameter."""
    B, C, H, W = x.shape
    HW = H * W
    itemsize = jnp.dtype(x.dtype).itemsize
    alpha = jnp.asarray(alpha, jnp.float32).reshape((1,))

    b_blk = _choose_batch_block(B, C)
    nb = B // b_blk

    # Generation-aware budgets: big tiles on v5e/v6e (128 MiB VMEM), conservative
    # on v7x (64 MiB physical per TensorCore).
    if _vmem_capacity_bytes() >= 128 * 1024 * 1024:
        budget, vmem_limit = 80 * 1024 * 1024, 100 * 1024 * 1024
    else:
        budget, vmem_limit = 24 * 1024 * 1024, 48 * 1024 * 1024

    if hw_tile is None:
        hw_tile = _choose_hw_tile(C, b_blk, HW, itemsize, budget)
    else:
        hw_tile = _round_up(hw_tile, 128)
    n_hw = _cdiv(HW, hw_tile)

    # Split the HW reduction in two so both v7x TensorCores stay busy at B == 1
    # (no effect on single-TC v5e/v6e besides overlapping the softmax tail).
    n_split = 2 if n_hw >= 2 else 1
    n_per = _cdiv(n_hw, n_split)
    mask_tail = (HW % hw_tile != 0) or (n_split * n_per != n_hw)

    x2 = x.reshape(B, C, HW)  # metadata-only reshape, no HBM copy

    if n_split * n_per == n_hw:
        x_idx = lambda s, b, k: (b, 0, s * n_per + k)
    else:
        # Uneven split: clamp the DMA to a valid tile; the kernel masks it out.
        x_idx = lambda s, b, k: (b, 0, jnp.minimum(s * n_per + k, n_hw - 1))

    # TODO(synk): in the degraded-tile regime (hw_tile ~128-256 for very large C)
    # a 3-deep pipeline (pipeline_mode=pl.Buffered(3)) on the x BlockSpecs would
    # re-hide DMA latency; omitted to keep the common path minimal.

    # Pass 1a: partial grams, accumulated over HW tiles (reduction axis last).
    gram = pl.pallas_call(
        functools.partial(
            _gram_partial_kernel,
            hw_tile=hw_tile, n_per=n_per, hw_total=HW, mask_tail=mask_tail,
        ),
        out_shape=jax.ShapeDtypeStruct((n_split, B, C, C), jnp.float32),
        grid=(n_split, nb, n_per),
        in_specs=[pl.BlockSpec((b_blk, C, hw_tile), x_idx)],
        out_specs=pl.BlockSpec((None, b_blk, C, C), lambda s, b, k: (s, b, 0, 0)),
        compiler_params=pltpu.CompilerParams(
            dimension_semantics=("parallel", "parallel", "arbitrary"),
            vmem_limit_bytes=vmem_limit,
        ),
    )(x2)

    # Pass 1b: sum split partials + softmax; weights emitted in x.dtype.
    w = pl.pallas_call(
        _softmax_weights_kernel,
        out_shape=jax.ShapeDtypeStruct((B, C, C), x.dtype),
        grid=(nb,),
        in_specs=[pl.BlockSpec((n_split, b_blk, C, C), lambda b: (0, b, 0, 0))],
        out_specs=pl.BlockSpec((b_blk, C, C), lambda b: (b, 0, 0)),
        compiler_params=pltpu.CompilerParams(
            dimension_semantics=("parallel",),
            vmem_limit_bytes=vmem_limit,
        ),
    )(gram)

    # Pass 2: y = alpha * (W @ x) + x, embarrassingly parallel over (B, HW tile).
    # TODO(synk): for C >~ 2.5K on v7x, add a C-row grid axis so W streams as
    # (tc, C) row panels instead of a fully resident (C, C) block.
    out = pl.pallas_call(
        _apply_kernel,
        out_shape=jax.ShapeDtypeStruct((B, C, HW), x.dtype),
        grid=(nb, n_hw),
        in_specs=[
            pl.BlockSpec(memory_space=pltpu.MemorySpace.SMEM),          # alpha
            pl.BlockSpec((b_blk, C, C), lambda b, k: (b, 0, 0)),        # W
            pl.BlockSpec((b_blk, C, hw_tile), lambda b, k: (b, 0, k)),  # x
        ],
        out_specs=pl.BlockSpec((b_blk, C, hw_tile), lambda b, k: (b, 0, k)),
        compiler_params=pltpu.CompilerParams(
            dimension_semantics=("parallel", "parallel"),
            vmem_limit_bytes=vmem_limit,
        ),
    )(alpha, w, x2)

    return out.reshape(B, C, H, W)


def cha_att_ref(x, alpha):
    """Pure-JAX reference matching the PyTorch forward (f32, highest precision)."""
    B, C, H, W = x.shape
    q = x.reshape(B, C, H * W).astype(jnp.float32)
    energy = jnp.einsum("bck,bdk->bcd", q, q, precision="highest")
    e_max = jnp.max(energy, axis=-1, keepdims=True)
    w = jax.nn.softmax(e_max - energy, axis=-1)
    y = jnp.einsum("bcd,bdk->bck", w, q, precision="highest")
    out = alpha[0] * y + q
    return out.reshape(B, C, H, W).astype(x.dtype)


def _check(got, want, atol, rtol, msg):
    ok = jnp.allclose(got.astype(jnp.float32), want.astype(jnp.float32),
                      atol=atol, rtol=rtol)
    assert bool(ok), f"mismatch vs reference: {msg}"


if __name__ == "__main__":
    key = jax.random.PRNGKey(0)
    k1, k2, k3 = jax.random.split(key, 3)

    # ScaleBlock alpha parameter (learnable scalar); non-trivial value so the
    # alpha * y path is actually exercised.
    alpha = jnp.array([0.75], dtype=jnp.float32)

    # Inputs are scaled so the exp() in the channel softmax is not hyper-
    # sensitive to MXU rounding differences between the kernel and the
    # reference (TPU f32 matmuls run at reduced precision by default).
    # Case 1: nominal small shape, single HW tile, batch folding (b_blk=2).
    x = jax.random.normal(k1, (2, 4, 16, 16), dtype=jnp.float32) * 0.1
    y = cha_att_block(x, alpha)
    jax.block_until_ready(y)
    _check(y, cha_att_ref(x, alpha), 3e-3, 3e-3, "single tile")

    # Case 2: force multiple HW tiles -> exercises the split accumulation path.
    y2 = cha_att_block(x, alpha, hw_tile=128)
    jax.block_until_ready(y2)
    _check(y2, cha_att_ref(x, alpha), 3e-3, 3e-3, "tiled accumulation + split")

    # Case 3: non-128-multiple spatial size, B == 1 -> ragged-tail lane mask.
    x3 = jax.random.normal(k2, (1, 6, 10, 10), dtype=jnp.float32) * 0.1
    y3 = cha_att_block(x3, alpha)
    jax.block_until_ready(y3)
    _check(y3, cha_att_ref(x3, alpha), 3e-3, 3e-3, "ragged spatial")

    # Case 4: ragged tail + odd tile count -> uneven split (clamped + masked
    # overshoot tile) together with multi-tile accumulation.
    x4 = jax.random.normal(k3, (2, 4, 18, 18), dtype=jnp.float32) * 0.1
    y4 = cha_att_block(x4, alpha, hw_tile=128)
    jax.block_until_ready(y4)
    _check(y4, cha_att_ref(x4, alpha), 3e-3, 3e-3, "uneven split + ragged tail")

    # Case 5: bf16 activations -> bf16 weights out of pass 1b, full-rate MXU.
    xb = (jax.random.normal(k1, (2, 4, 16, 16), dtype=jnp.float32) * 0.1
          ).astype(jnp.bfloat16)
    yb = cha_att_block(xb, alpha)
    jax.block_until_ready(yb)
    _check(yb, cha_att_ref(xb, alpha), 2e-2, 2e-2, "bf16 path")

    print("KERNEL_OK")
</pallas_src>

<mosaic_0001>
module attributes {stable_mosaic.version = 11 : i64} {
  func.func @_gram_partial_kernel(%arg0: i32, %arg1: i32, %arg2: i32, %arg3: memref<2x4x256xf32, #tpu.memory_space<vmem>>, %arg4: memref<1x2x4x4xf32, #tpu.memory_space<vmem>>) attributes {dimension_semantics = [#tpu.dimension_semantics<parallel>, #tpu.dimension_semantics<parallel>, #tpu.dimension_semantics<arbitrary>], iteration_bounds = array<i64: 1, 1, 1>, scalar_prefetch = 0 : i64, scratch_operands = 0 : i64, tpu.core_type = #tpu.core_type<tc>, window_params = [{transform_indices = @transform_0, window_bounds = array<i64: 2, 4, 256>}, {transform_indices = @transform_1, window_bounds = array<i64: 1, 2, 4, 4>}]} {
    %c0_i32 = arith.constant 0 : i32
    %0 = arith.cmpi eq, %arg2, %c0_i32 : i32
    %1 = arith.extui %0 : i1 to i32
    %c0_i32_0 = arith.constant 0 : i32
    %2 = arith.cmpi ne, %1, %c0_i32_0 : i32
    scf.if %2 {
      %cst_11 = arith.constant 0.000000e+00 : f32
      %11 = vector.broadcast %cst_11 : f32 to vector<2x4x4xf32>
      %c0_12 = arith.constant 0 : index
      %c0_13 = arith.constant 0 : index
      %c0_14 = arith.constant 0 : index
      %c0_15 = arith.constant 0 : index
      %12 = vector.load %arg4[%c0_12, %c0_13, %c0_14, %c0_15] : memref<1x2x4x4xf32, #tpu.memory_space<vmem>>, vector<1x2x4x4xf32>
      %13 = vector.shape_cast %12 : vector<1x2x4x4xf32> to vector<2x4x4xf32>
      %14 = vector.shape_cast %11 : vector<2x4x4xf32> to vector<1x2x4x4xf32>
      tpu.vector_store %arg4[%c0_12, %c0_13, %c0_14, %c0_15], %14 {strides = array<i32>} : memref<1x2x4x4xf32, #tpu.memory_space<vmem>>, vector<1x2x4x4xf32>,
    } else {
    }
    %c0 = arith.constant 0 : index
    %c0_1 = arith.constant 0 : index
    %c0_2 = arith.constant 0 : index
    %3 = vector.load %arg3[%c0, %c0_1, %c0_2] : memref<2x4x256xf32, #tpu.memory_space<vmem>>, vector<2x4x256xf32>
    %c0_3 = arith.constant 0 : index
    %c0_4 = arith.constant 0 : index
    %c0_5 = arith.constant 0 : index
    %c0_6 = arith.constant 0 : index
    %4 = vector.load %arg4[%c0_3, %c0_4, %c0_5, %c0_6] : memref<1x2x4x4xf32, #tpu.memory_space<vmem>>, vector<1x2x4x4xf32>
    %5 = vector.shape_cast %4 : vector<1x2x4x4xf32> to vector<2x4x4xf32>
    "tpu.trace_start"() <{level = 10 : i32, message = "bck,bdk->bcd"}> : () -> ()
    %cst = arith.constant dense<0.000000e+00> : vector<2x4x4xf32>
    %6 = tpu.matmul %3, %3, %cst {dimension_numbers = #tpu.dot_dimension_numbers<[2], [2], [1], [1], [0, 0, 0, 1, 1, 1], [0], [0]>} : vector<2x4x256xf32>, vector<2x4x256xf32>, vector<2x4x4xf32> -> vector<2x4x4xf32>
    "tpu.trace_stop"() : () -> ()
    %7 = arith.addf %5, %6 : vector<2x4x4xf32>
    %c0_7 = arith.constant 0 : index
    %c0_8 = arith.constant 0 : index
    %c0_9 = arith.constant 0 : index
    %c0_10 = arith.constant 0 : index
    %8 = vector.load %arg4[%c0_7, %c0_8, %c0_9, %c0_10] : memref<1x2x4x4xf32, #tpu.memory_space<vmem>>, vector<1x2x4x4xf32>
    %9 = vector.shape_cast %8 : vector<1x2x4x4xf32> to vector<2x4x4xf32>
    %10 = vector.shape_cast %7 : vector<2x4x4xf32> to vector<1x2x4x4xf32>
    tpu.vector_store %arg4[%c0_7, %c0_8, %c0_9, %c0_10], %10 {strides = array<i32>} : memref<1x2x4x4xf32, #tpu.memory_space<vmem>>, vector<1x2x4x4xf32>,
    return
  }
  func.func @transform_0(%arg0: i32, %arg1: i32, %arg2: i32) -> (i32, i32, i32) {
    %c1_i32 = arith.constant 1 : i32
    %0 = arith.muli %arg0, %c1_i32 : i32
    %1 = arith.addi %0, %arg2 : i32
    %c0_i32 = arith.constant 0 : i32
    %c0_i32_0 = arith.constant 0 : i32
    return %arg1, %c0_i32, %1 : i32, i32, i32
  }
  func.func @transform_1(%arg0: i32, %arg1: i32, %arg2: i32) -> (i32, i32, i32, i32) {
    %c0_i32 = arith.constant 0 : i32
    %c0_i32_0 = arith.constant 0 : i32
    %c0_i32_1 = arith.constant 0 : i32
    return %arg0, %arg1, %c0_i32, %c0_i32_0 : i32, i32, i32, i32
  }
}

</mosaic_0001>

<bundles_post_ra>
// kernel: tpu_custom_call.1
= control target key start
LH: loop header
LB: loop body
LE: loop exit
PB: predicated region body
PF: predicated region fallthrough
CT: control target
= control target key end

     0   :  { %6 = vsyncpa [#allocation3], 0  ;;  %s310_s0 = inlined_call_operand.hbm [shape: f32[2,4,256], index: 0, kind: input, shape index: {}]   ;;  %s311_s1 = inlined_call_operand.hbm [shape: f32[1,2,4,4], index: 1, kind: output, shape index: {}]  }
   0x1   :  { %7 = vsyncpa [#allocation4], 0  ;;  %s265_s6 = smov [#allocation2]   ;;  %s217_s10 = scalar_lea.hbm %s310_s0, 256 }
   0x2   :  { %s17_s7 = sshll.u32 %s265_s6, 4  ;;  %p218_p0 = scmp.ne.s32.totalorder %s310_s0, %s217_s10  ;;  %s18_s7 = int_to_ptr.vmem [resolvable:$true] %s17_s7 }
   0x3   :  { %p221_p1 = scmp.lt.u32.totalorder %s217_s10, %s310_s0 }
   0x5   :  { %p223_p2 = pnand %p221_p1, %p218_p0 }
   0x7   :  { %226 = shalt.err (!%p223_p2)
}
   0x8   :  { %s227_s15 = scalar_lea.vmem %s18_s7, 256  ;;  %p232_p4 = scmp.lt.s32.totalorder %s18_s7, %s18_s7 }
   0x9   :  { %p228_p3 = scmp.ne.s32.totalorder %s18_s7, %s227_s15  ;;  %p233_p5 = scmp.lt.s32.totalorder %s227_s15, %s227_s15 }
   0xb   :  { %p234_p6 = por %p233_p5, %p232_p4 }
   0xd   :  { %p235_p7 = pnand %p234_p6, %p228_p3 }
   0xf   :  { %238 = shalt.err (!%p235_p7)
}
  0x10   :  { %s266_s16 = smov 128   ;;  %s267_s17 = smov 8  }
  0x11   :  { %23 = dma.hbm_to_vmem [thread:$0]  %s310_s0, 256, %s18_s7, [#allocation3], %s266_s16, %s266_s16, %s267_s17  }
  0x12   :  { %261 = dma.done.wait [#allocation3], 256  }
  0x13   :  { %262 = vsyncadd [#allocation3], 4294967040  ;;  %vm33_vm0 = vcmask 27648   ;;  %v268_v0 = vmov 0.0   ;;  %v36_v1 = vld [vmem:[#allocation2] sm:$0xff]  ;;  %v37_v2 = vld [vmem:[#allocation2 + $0x8] sm:$0xff] }
  0x14   :  { %34 = vst.msk [vmem:[#allocation5] sm:$0xf] %vm33_vm0, %v268_v0  ;;  %35 = vst.msk [vmem:[#allocation5 + $0x4] sm:$0xf] %vm33_vm0, %v268_v0  ;;  %v41_v3 = vcombine.high %v36_v1, %v36_v1  ;;  %v114_v4 = vcombine.high %v37_v2, %v37_v2  ;;  %s269_s0 = smov [#allocation5]  }
  0x15   :  { %s196_s20 = sshll.u32 %s269_s0, 4  ;;  %s197_s20 = int_to_ptr.vmem [resolvable:$true] %s196_s20 }
  0x16   :  { %43 = vmatprep.subr.mxu0 %v41_v3  ;;  %116 = vmatprep.subr.mxu1 %v114_v4  ;;  %s239_s21 = scalar_lea.vmem %s197_s20, 128  ;;  %p244_p9 = scmp.lt.s32.totalorder %s197_s20, %s197_s20 }
  0x17   :  { %44 = vmatpush1.xpose.msra.mxu0 %v36_v1  ;;  %117 = vmatpush1.xpose.msra.mxu1 %v37_v2  ;;  %p240_p8 = scmp.ne.s32.totalorder %s197_s20, %s239_s21  ;;  %p245_p10 = scmp.lt.s32.totalorder %s239_s21, %s239_s21 }
  0x18   :  { %107 = vmatprep.mubr.f32.mxu0 %v41_v3  ;;  %180 = vmatprep.mubr.f32.mxu1 %v114_v4 }
  0x19   :  { %p246_p11 = por %p245_p10, %p244_p9 }
  0x1a   :  { %108 = vmatmul.mubr.f32.vlgmr.msra.gmra.mrb[0].mxu0 %v36_v1  ;;  %181 = vmatmul.mubr.f32.vlgmr.msra.gmra.mrb[0].mxu1 %v37_v2 }
  0x1b   :  { %v38_v5 = vld [vmem:[#allocation5] sm:$0xf]  ;;  %v39_v6 = vld [vmem:[#allocation5 + $0x4] sm:$0xf]  ;;  %p247_p12 = pnand %p246_p11, %p240_p8 }
  0xed   :  { %v109_v7 = vpop.f32.mrb[0].mxu0  ;;  %v182_v8 = vpop.f32.mrb[0].mxu1 }
  0xee   :  { %v186_v9 = vadd.f32 %v109_v7, %v38_v5  ;;  %v187_v10 = vadd.f32 %v182_v8, %v39_v6  ;;  %v111_v11 = vpop.f32.mrb[1].mxu0  ;;  %v184_v12 = vpop.f32.mrb[1].mxu1 }
  0xf0   :  { %189 = vst.msk [vmem:[#allocation5] sm:$0xf] %vm33_vm0, %v186_v9  ;;  %190 = vst.msk [vmem:[#allocation5 + $0x4] sm:$0xf] %vm33_vm0, %v187_v10 }
  0xf1   :  { %250 = shalt.err (!%p247_p12)
}
  0xf2   :  { %s251_s24 = scalar_lea.hbm %s311_s1, 128 }
  0xf3   :  { %p252_p13 = scmp.ne.s32.totalorder %s311_s1, %s251_s24  ;;  %p255_p0 = scmp.lt.u32.totalorder %s251_s24, %s311_s1 }
  0xf5   :  { %p257_p1 = pnand %p255_p0, %p252_p13 }
  0xf7   :  { %260 = shalt.err (!%p257_p1)
}
  0xf8   :  { %s270_s29 = smov 64   ;;  %s271_s30 = smov 4  }
  0xf9   :  { %202 = dma.vmem_to_hbm [thread:$0]  %s197_s20, 128, %s311_s1, [#allocation4], %s270_s29, %s270_s29, %s271_s30  }
  0xfa   :  { %263 = dma.done.wait [#allocation4], 128  }
  0xfb   :  { %264 = vsyncadd [#allocation4], 4294967168 }
  0xfc   :  { %206 = vsyncpa [#allocation3], 1 }
  0xfd   :  { %207 = vsyncpa [#allocation4], 1 }

</bundles_post_ra>
